<compile_context>
chip_gen: v7x
topology: tpu7x:2x2x1
jax: 0.10.0
libtpu: 0.0.40
codegen_flags: <defaults>
</compile_context>

<pallas_src>
import jax
import jax.numpy as jnp
from jax.experimental import pallas as pl
from jax.experimental.pallas import tpu as pltpu

MAX_TILE_TOKENS = 256  # tokens gathered per grid step (multiple of 8)


def _embed_gather_kernel(ids_ref, table_hbm, out_ref, copy_sem):
    # ids_ref:   (n_pad,) int32  scalar-prefetched token ids (SMEM)
    # table_hbm: (vocab, emb)    embedding table left in HBM (memory_space=ANY)
    # out_ref:   (TN, emb)       output VMEM tile (auto-pipelined writeback)
    # copy_sem:  single DMA semaphore shared by all row copies of this tile
    tn = out_ref.shape[0]
    vocab = table_hbm.shape[0]
    base = pl.program_id(0) * tn

    # Issue all row DMAs first so they are in flight concurrently.
    @pl.loop(0, tn)
    def _start(j):
        tok = ids_ref[base + j]
        tok = jnp.clip(tok, 0, vocab - 1)  # PyTorch would raise on OOB; clamp.
        pltpu.make_async_copy(
            table_hbm.at[pl.ds(tok, 1), :],
            out_ref.at[pl.ds(j, 1), :],
            copy_sem,
        ).start()

    # Retire them with ONE wait sized for the full output tile: tn row copies
    # of emb*4 bytes each signal exactly one (tn, emb) tile's worth of bytes on
    # the shared semaphore (pattern from the reference paged-attention kernel).
    pltpu.make_async_copy(out_ref, out_ref, copy_sem).wait()


def _round_up(x, m):
    return (x + m - 1) // m * m


def token_embedding(tokens, table, pad_idx):
    """Pallas equivalent of nn.Embedding(vocab, emb, padding_idx)(tokens.long()).

    tokens: int array (batch, seq); table: (vocab, emb) float32 with the
    padding_idx row zeroed.  Returns (batch, seq, emb) float32.
    """
    batch, seq = tokens.shape
    vocab, emb = table.shape

    flat = tokens.reshape(-1).astype(jnp.int32)
    n = flat.shape[0]

    # Tile size: as large as possible (<= MAX_TILE_TOKENS), multiple of 8.
    tn = min(MAX_TILE_TOKENS, _round_up(n, 8))
    n_pad = _round_up(n, tn)
    if n_pad != n:
        # Pad with pad_idx (maps to the zero row); tail is sliced off below.
        # TODO(synk): handle the ragged tail in-kernel (masked final tile) to
        # avoid the pad/slice HBM copies for very large token counts.
        flat = jnp.pad(flat, (0, n_pad - n), constant_values=pad_idx)

    grid = (n_pad // tn,)

    # VMEM working set is just the double-buffered output tile (+ slack);
    # the table stays in HBM.
    vmem_limit = max(2 * tn * emb * 4 + (2 << 20), 16 * 1024 * 1024)

    out = pl.pallas_call(
        _embed_gather_kernel,
        out_shape=jax.ShapeDtypeStruct((n_pad, emb), table.dtype),
        grid_spec=pltpu.PrefetchScalarGridSpec(
            num_scalar_prefetch=1,                    # token ids -> SMEM
            grid=grid,
            in_specs=[
                pl.BlockSpec(memory_space=pl.ANY),    # table stays in HBM
            ],
            out_specs=pl.BlockSpec((tn, emb), lambda i, ids: (i, 0)),
            scratch_shapes=[pltpu.SemaphoreType.DMA(())],
        ),
        compiler_params=pltpu.CompilerParams(
            dimension_semantics=("parallel",),
            vmem_limit_bytes=vmem_limit,
        ),
    )(flat, table)

    if n_pad != n:
        out = out[:n]
    return out.reshape(batch, seq, emb)


def make_embedding_table(key, vocab_size, emb_size, pad_idx):
    # nn.Embedding default init: N(0, 1), padding_idx row zeroed.
    table = jax.random.normal(key, (vocab_size, emb_size), dtype=jnp.float32)
    table = table.at[pad_idx].set(0.0)
    return table


if __name__ == "__main__":
    vocab_size, emb_size, pad_idx = 256, 128, 0   # emb is lane-dense (128)
    batch, seq = 2, 8

    key = jax.random.PRNGKey(0)
    k_tab, k_tok = jax.random.split(key)

    table = make_embedding_table(k_tab, vocab_size, emb_size, pad_idx)
    tokens = jax.random.randint(k_tok, (batch, seq), 0, vocab_size,
                                dtype=jnp.int32)
    tokens = tokens.at[0, 0].set(pad_idx)  # exercise the padding row

    out = token_embedding(tokens, table, pad_idx)
    out = jax.block_until_ready(out)

    # Reference check: plain JAX gather (bit-exact; the kernel is a pure copy).
    ref = jnp.take(table, tokens, axis=0)
    assert out.shape == (batch, seq, emb_size)
    assert jnp.allclose(out, ref, atol=0.0), "mismatch vs reference gather"
    assert jnp.all(out[0, 0] == 0.0), "padding_idx row must be zero"

    print("KERNEL_OK")
</pallas_src>

<mosaic_0001>
module attributes {stable_mosaic.version = 11 : i64} {
  func.func @_embed_gather_kernel(%arg0: i32, %arg1: memref<16xi32, #tpu.memory_space<smem>>, %arg2: memref<256x128xf32, #tpu.memory_space<any>>, %arg3: memref<16x128xf32, #tpu.memory_space<vmem>>, %arg4: memref<!tpu.dma_semaphore, #tpu.memory_space<semaphore_mem>>) attributes {dimension_semantics = [#tpu.dimension_semantics<parallel>], iteration_bounds = array<i64: 1>, scalar_prefetch = 1 : i64, scratch_operands = 1 : i64, tpu.core_type = #tpu.core_type<tc>, window_params = [{}, {transform_indices = @transform_1, window_bounds = array<i64: 16, 128>}]} {
    %c16_i32 = arith.constant 16 : i32
    %0 = arith.muli %arg0, %c16_i32 : i32
    %c0_i32 = arith.constant 0 : i32
    %c16_i32_0 = arith.constant 16 : i32
    %1 = arith.addi %c0_i32, %c16_i32_0 : i32
    %c1_i32 = arith.constant 1 : i32
    scf.for %arg5 = %c0_i32 to %1 step %c1_i32  : i32 {
      %c1_i32_2 = arith.constant 1 : i32
      %2 = arith.muli %arg5, %c1_i32_2 : i32
      %c0_i32_3 = arith.constant 0 : i32
      %3 = arith.addi %c0_i32_3, %2 : i32
      %4 = arith.addi %0, %3 : i32
      %5 = arith.index_cast %4 : i32 to index
      %6 = memref.load %arg1[%5] : memref<16xi32, #tpu.memory_space<smem>>
      %c0_i32_4 = arith.constant 0 : i32
      %c255_i32 = arith.constant 255 : i32
      %7 = arith.maxsi %c0_i32_4, %6 : i32
      %8 = arith.minsi %c255_i32, %7 : i32
      %c0_i32_5 = arith.constant 0 : i32
      %9 = tpu.memref_slice %arg2[%8, %c0_i32_5] : memref<256x128xf32, #tpu.memory_space<any>> -> memref<1x128xf32, #tpu.memory_space<any>>
      %c0_i32_6 = arith.constant 0 : i32
      %10 = tpu.memref_slice %arg3[%3, %c0_i32_6] : memref<16x128xf32, #tpu.memory_space<vmem>> -> memref<1x128xf32, #tpu.memory_space<vmem>>
      tpu.enqueue_dma source(%9 : memref<1x128xf32, #tpu.memory_space<any>>) target(%10 : memref<1x128xf32, #tpu.memory_space<vmem>>) target_semaphore(%arg4 : memref<!tpu.dma_semaphore, #tpu.memory_space<semaphore_mem>>)
    }
    %c16_i32_1 = arith.constant 16 : i32
    tpu.wait_dma2 semaphore(%arg4 : memref<!tpu.dma_semaphore, #tpu.memory_space<semaphore_mem>>) src(%arg3 : memref<16x128xf32, #tpu.memory_space<vmem>>) dst(%arg3 : memref<16x128xf32, #tpu.memory_space<vmem>>)
    return
  }
  func.func @transform_1(%arg0: i32, %arg1: memref<16xi32, #tpu.memory_space<smem>>) -> (i32, i32) {
    %c0_i32 = arith.constant 0 : i32
    %c0_i32_0 = arith.constant 0 : i32
    return %arg0, %c0_i32 : i32, i32
  }
}

</mosaic_0001>

<bundles_post_ra>
// kernel: tpu_custom_call.1
= control target key start
LH: loop header
LB: loop body
LE: loop exit
PB: predicated region body
PF: predicated region fallthrough
CT: control target
= control target key end

     0   :  { %s233_s0 = inlined_call_operand.hbm [shape: s32[16], index: 0, kind: input, shape index: {}]   ;;  %s234_s1 = inlined_call_operand.hbm [shape: f32[256,128], index: 1, kind: input, shape index: {}]   ;;  %s235_s2 = inlined_call_operand.hbm [shape: f32[16,128], index: 2, kind: output, shape index: {}]  }
   0x1   :  { %s93_s11 = scalar_lea.hbm %s233_s0, 16 }
   0x2   :  { %p94_p0 = scmp.ne.s32.totalorder %s233_s0, %s93_s11  ;;  %p97_p1 = scmp.lt.u32.totalorder %s93_s11, %s233_s0 }
   0x4   :  { %p99_p2 = pnand %p97_p1, %p94_p0 }
   0x6   :  { %102 = shalt.err (!%p99_p2)  }
   0x7   :  { %s163_s16 = smov [#allocation4]  }
   0x8   :  { %8 = dma.hbm_to_smem %s233_s0, 16, %s163_s16, [#allocation3] }
   0x9   :  { %153 = dma.done.wait [#allocation3], 16 }
   0xa   :  { %154 = vsyncadd [#allocation3], 4294967280 }
   0xb   :  { %10 = sfence }
   0xc   :  { %11 = vsyncpa [#allocation6], 0  ;;  %s194_s19 = smov 0  }
   0xd LB: > { %s20_s20 = sld [smem:[#allocation4 + %s161_s19]]  ;;  %s27_s21 = scalar_lea.vmem [#allocation5], %s161_s19  ;;  %s161_s19 = sphi %s194_s19, %s18_s19  }
   0xe   : > { %s35_s22 = sshll.u32 %s27_s21, 4  ;;  %s105_s29 = scalar_lea.hbm %s234_s1, 4096  ;;  %s36_s22 = int_to_ptr.vmem [resolvable:$true] %s35_s22 }
  0x13   : > { %p21_p3 = scmp.gt.s32.totalorder %s20_s20, 0  ;;  %p72_p4 = scmp.lt.s32.totalorder %s20_s20, 255 }
  0x15   : > { %s237_s20 = smov (!%p21_p3, %s20_s20), 0 }
  0x16   : > { %s239_s20 = smov (!%p72_p4, %s237_s20), 255 }
  0x17   : > { %s77_s0 = sshll.u32 %s239_s20, 4 }
  0x18   : > { %s26_s25 = scalar_lea.hbm %s234_s1, %s77_s0 }
  0x19   : > { %s103_s26 = scalar_lea.hbm %s26_s25, 16  ;;  %p106_p6 = scmp.lt.u32.totalorder %s26_s25, %s234_s1 }
  0x1a   : > { %p104_p5 = scmp.ne.s32.totalorder %s26_s25, %s103_s26  ;;  %p107_p7 = scmp.lt.u32.totalorder %s105_s29, %s103_s26 }
  0x1b   : > { %p109_p9 = scmp.lt.u32.totalorder %s103_s26, %s26_s25 }
  0x1c   : > { %p108_p8 = por %p107_p7, %p106_p6 }
  0x1e   : > { %p110_p10 = por %p109_p9, %p108_p8 }
  0x20   : > { %p111_p11 = pnand %p110_p10, %p104_p5 }
  0x22   : > { %114 = shalt.err (!%p111_p11)  }
  0x23   : > { %s115_s4 = scalar_lea.vmem %s36_s22, 16  ;;  %s164_s5 = smov [#allocation5]  }
  0x24   : > { %p116_p12 = scmp.ne.s32.totalorder %s36_s22, %s115_s4  ;;  %s117_s6 = sshll.u32 %s164_s5, 4  ;;  %s210_s6 = int_to_ptr.vmem [resolvable:$false] %s117_s6 }
  0x25   : > { %s119_s7 = scalar_lea.vmem %s210_s6, 256  ;;  %p120_p13 = scmp.lt.s32.totalorder %s36_s22, %s210_s6 }
  0x26   : > { %p121_p0 = scmp.lt.s32.totalorder %s119_s7, %s115_s4 }
  0x28   : > { %p122_p1 = por %p121_p0, %p120_p13 }
  0x2a   : > { %p123_p2 = pnand %p122_p1, %p116_p12 }
  0x2c   : > { %126 = shalt.err (!%p123_p2)  }
  0x2d   : > { %38 = dma.hbm_to_vmem [thread:$0]  %s26_s25, 16, %s36_s22, [#allocation2] }
  0x2e   : > { %s18_s19 = sadd.s32 1, %s161_s19  }
  0x2f   : > { %p15_p3 = scmp.ge.s32.totalorder %s18_s19, 16  }
  0x31   :  { %17 = sbr.rel (!%p15_p3) target bundleno = 13 (0xd), region = 33 }
  0x38   :  { %155 = dma.done.wait [#allocation2], 256 }
  0x39   :  { %156 = vsyncadd [#allocation2], 4294967040  ;;  %p128_p4 = scmp.ne.s32.totalorder %s210_s6, %s119_s7  ;;  %p132_p5 = scmp.lt.s32.totalorder %s210_s6, %s210_s6 }
  0x3a   :  { %p133_p6 = scmp.lt.s32.totalorder %s119_s7, %s119_s7 }
  0x3c   :  { %p134_p7 = por %p133_p6, %p132_p5 }
  0x3e   :  { %p135_p8 = pnand %p134_p7, %p128_p4 }
  0x40   :  { %138 = shalt.err (!%p135_p8)
}
  0x41   :  { %s139_s10 = scalar_lea.hbm %s235_s2, 256 }
  0x42   :  { %p140_p9 = scmp.ne.s32.totalorder %s235_s2, %s139_s10  ;;  %p143_p10 = scmp.lt.u32.totalorder %s139_s10, %s235_s2 }
  0x44   :  { %p145_p11 = pnand %p143_p10, %p140_p9 }
  0x46   :  { %148 = shalt.err (!%p145_p11)
}
  0x47   :  { %s165_s14 = smov 128   ;;  %s166_s15 = smov 8  }
  0x48   :  { %53 = dma.vmem_to_hbm [thread:$0]  %s210_s6, 256, %s235_s2, [#allocation6], %s165_s14, %s165_s14, %s166_s15  }
  0x49   :  { %157 = dma.done.wait [#allocation6], 256  }
  0x4a   :  { %158 = vsyncadd [#allocation6], 4294967040 }
  0x4b   :  { %57 = vsyncpa [#allocation6], 1 }
  0x4c   :  { %58 = vsyncmov [#allocation2] }
  0x4f   :  { %s59_s18 = vpop.sfrf %58 }
  0x50   :  { %p78_p12 = scmp.ne.s32.totalorder %s59_s18, 0 }
  0x52   :  { %63 = shalt.err (%p78_p12)  }

</bundles_post_ra>
